<compile_context>
chip_gen: v6e
topology: v6e:2x2x1
jax: 0.10.0
libtpu: 0.0.40
codegen_flags: <defaults>
</compile_context>

<pallas_src>
import functools
import math

import jax
import jax.numpy as jnp
from jax.experimental import pallas as pl
from jax.experimental.pallas import tpu as pltpu

_EPS = 1e-5
_TARGET_STEP_IN_BYTES = 8 << 20     # aim for >=4-8 MiB of input per grid step
_PIPELINE_VMEM_BUDGET = 32 << 20    # double-buffered tiles + f32 temporaries
_MAX_GROUPED_LANES = 512            # cap on lcm(C,128) packing width


# ----------------------------- kernels --------------------------------------

def _split_bf16(v32):
    """Split an f32 array into (hi, lo) bf16 parts; hi+lo ~ v32 to ~2^-16 rel."""
    hi = v32.astype(jnp.bfloat16)
    lo = (v32 - hi.astype(jnp.float32)).astype(jnp.bfloat16)
    return hi, lo


def _seg_sum(v32, m01):
    """Segmented sum of f32 `v32` (packed rows) via two exact bf16 MXU passes.

    m01 is a 0/1 block-diagonal matrix stored in bf16 (exact), so the only
    rounding comes from the hi/lo split of v32.  Accuracy is comparable to a
    3-pass Precision.HIGH f32 matmul, but with fewer MXU passes and a
    guaranteed-standard bf16 matmul lowering.
    """
    hi, lo = _split_bf16(v32)
    return (jnp.dot(hi, m01, preferred_element_type=jnp.float32)
            + jnp.dot(lo, m01, preferred_element_type=jnp.float32))


def _ln_grouped_kernel(x_ref, w_ref, m_ref, o_ref, *, inv_c):
    # x_ref: (tm, Cb) tile; each vector row packs G = Cb//C independent logical
    # rows of length C.  m_ref: (Cb, Cb) bf16 block-diagonal 0/1 matrix with
    # M[i, j] = 1 iff i//C == j//C, so (v @ M) broadcasts every segment's sum
    # back over that segment (segmented reduce on the idle MXU).
    # w_ref: (1, Cb) f32 weight tiled G times.
    x = x_ref[...].astype(jnp.float32)
    m01 = m_ref[...]
    mu = _seg_sum(x, m01) * inv_c
    d = x - mu
    var = _seg_sum(d * d, m01) * inv_c           # unbiased=False (mean of squares)
    inv = jax.lax.rsqrt(var + _EPS)
    o_ref[...] = (x * inv * w_ref[...]).astype(o_ref.dtype)


def _ln_rows_kernel(x_ref, w_ref, o_ref):
    # Plain per-row path (used when lane-dense packing is not worthwhile).
    # x_ref: (tm, C) tile of independent rows; w_ref: (1, C) f32 scale.
    x = x_ref[...].astype(jnp.float32)
    mu = jnp.mean(x, axis=-1, keepdims=True)
    d = x - mu
    var = jnp.mean(d * d, axis=-1, keepdims=True)   # unbiased=False
    inv = jax.lax.rsqrt(var + _EPS)
    o_ref[...] = (x * inv * w_ref[...]).astype(o_ref.dtype)


# ----------------------------- wrapper helpers -------------------------------

def _round_up(v, m):
    return ((v + m - 1) // m) * m


def _physical_vmem_bytes():
    try:
        return int(getattr(pltpu.get_tpu_info(), "vmem_capacity_bytes", 64 << 20))
    except Exception:
        return 64 << 20   # conservative default: v7x per-core VMEM


def _choose_block_rows(n_rows, row_in_bytes, row_pipe_bytes):
    """Largest useful row tile: ~8 MiB of input per step, capped by VMEM budget."""
    target = max(512, _TARGET_STEP_IN_BYTES // max(row_in_bytes, 1))
    by_vmem = max(8, _PIPELINE_VMEM_BUDGET // max(row_pipe_bytes, 1))
    tm = min(target, by_vmem)
    if tm >= n_rows:
        if n_rows >= 16:
            # Keep >=2 grid steps so "parallel" can shard rows over v7x's 2 TCs.
            return min(n_rows, _round_up(pl.cdiv(n_rows, 2), 8))
        return n_rows                       # full dim -> no (8,128) constraint
    tm = max(8, (tm // 8) * 8)              # sublane-aligned partial tile
    steps = pl.cdiv(n_rows, tm)
    if steps % 2 == 1:
        # An even step count keeps v7x's two TensorCores load-balanced.
        tm = max(8, _round_up(pl.cdiv(n_rows, steps + 1), 8))
    return tm


# ----------------------------- public entry ----------------------------------

def biasfree_layernorm(x, weight):
    """x: (..., C), weight: (C,).  Returns same shape/dtype as x."""
    orig_shape = x.shape
    C = orig_shape[-1]
    assert weight.shape == (C,)

    x2 = x.reshape(-1, C)
    R = x2.shape[0]
    if R == 0:
        return x
    w32 = weight.astype(jnp.float32)        # cast once, stays VMEM-resident

    Cb = math.lcm(C, 128)
    G = Cb // C
    use_grouped = (G > 1) and (Cb <= _MAX_GROUPED_LANES)

    if use_grouped:
        R_pad = _round_up(R, G)
        if R_pad != R:
            # One extra HBM copy, but far cheaper than dropping to the masked path.
            x2 = jnp.pad(x2, ((0, R_pad - R), (0, 0)))
        xk = x2.reshape(R_pad // G, Cb)                   # free contiguous reshape
        wk = jnp.tile(w32, G).reshape(1, Cb)
        seg_i = jax.lax.broadcasted_iota(jnp.int32, (Cb, Cb), 0) // C
        seg_j = jax.lax.broadcasted_iota(jnp.int32, (Cb, Cb), 1) // C
        m01 = (seg_i == seg_j).astype(jnp.bfloat16)       # 0/1 exact in bf16
        kernel = functools.partial(_ln_grouped_kernel, inv_c=1.0 / C)
    else:
        # TODO(synk): for C where lcm(C,128) > _MAX_GROUPED_LANES (e.g. C=100)
        # stores remain lane-masked; a two-level sublane x lane packing would
        # make those dense as well.
        xk = x2
        wk = w32.reshape(1, C)
        m01 = None
        kernel = _ln_rows_kernel

    n_rows, Cb_eff = xk.shape
    isz = x.dtype.itemsize
    row_in_bytes = Cb_eff * isz
    # Per-row pipeline footprint: double-buffered input + output tiles plus
    # ~4 live f32-equivalent temporaries per element inside the kernel body.
    row_pipe_bytes = 2 * Cb_eff * (isz + isz) + 4 * Cb_eff * 4
    tm = _choose_block_rows(n_rows, row_in_bytes, row_pipe_bytes)
    grid = (pl.cdiv(n_rows, tm),)           # ragged last block is masked by Pallas

    # Scoped-VMEM limit sized from the actual footprint (+ headroom), clamped to
    # the device's physical VMEM; important on v7x's 64 MiB.
    footprint = tm * row_pipe_bytes + 4 * Cb_eff * Cb_eff + 8 * Cb_eff
    vmem_limit = int(min(max(footprint + (12 << 20), 32 << 20),
                         max(_physical_vmem_bytes() - (8 << 20), 32 << 20)))

    in_specs = [
        pl.BlockSpec((tm, Cb_eff), lambda i: (i, 0)),   # row tile of x
        pl.BlockSpec((1, Cb_eff), lambda i: (0, 0)),    # shared f32 weight
    ]
    args = [xk, wk]
    if use_grouped:
        in_specs.append(pl.BlockSpec((Cb_eff, Cb_eff), lambda i: (0, 0)))
        args.append(m01)

    matmul_flops = 4 * n_rows * Cb_eff * Cb_eff if use_grouped else 0
    cost = pl.CostEstimate(
        flops=int(10 * n_rows * Cb_eff + matmul_flops),
        transcendentals=int(n_rows * Cb_eff),
        bytes_accessed=int(2 * n_rows * Cb_eff * isz + Cb_eff * 4),
    )

    out = pl.pallas_call(
        kernel,
        out_shape=jax.ShapeDtypeStruct((n_rows, Cb_eff), x.dtype),
        grid_spec=pltpu.PrefetchScalarGridSpec(
            num_scalar_prefetch=0,
            grid=grid,
            in_specs=in_specs,
            out_specs=pl.BlockSpec((tm, Cb_eff), lambda i: (i, 0)),
        ),
        compiler_params=pltpu.CompilerParams(
            dimension_semantics=("parallel",),
            vmem_limit_bytes=vmem_limit,
        ),
        cost_estimate=cost,
    )(*args)

    if use_grouped:
        out = out.reshape(-1, C)[:R]
    return out.reshape(orig_shape)


# ----------------------------- self-test --------------------------------------

def _reference(x, w):
    mu = jnp.mean(x, axis=-1, keepdims=True)
    sigma = jnp.mean((x - mu) ** 2, axis=-1, keepdims=True)   # unbiased=False
    return x / jnp.sqrt(sigma + _EPS) * w


def _check(x, w, atol, rtol, name):
    y = jax.block_until_ready(biasfree_layernorm(x, w))
    ref = _reference(x, w)
    assert y.shape == x.shape and y.dtype == x.dtype, f"{name}: shape/dtype mismatch"
    assert jnp.allclose(y, ref, atol=atol, rtol=rtol), f"{name}: mismatch vs reference"


if __name__ == "__main__":
    key = jax.random.PRNGKey(0)
    k1, k2, k3, k4, k5 = jax.random.split(key, 5)

    # The segmented MXU reduce uses a two-term bf16 split of the f32 operand
    # (~2^-16 relative rounding), so a few e-5 of deviation vs the pure-f32
    # reference is expected; semantic bugs would show up at >= 1e-2.
    tol = 5e-5

    # Main shape consistent with the transformer use: (B, H*W, C) after rearrange.
    B, N, C = 2, 8, 32
    x = jax.random.normal(k1, (B, N, C), dtype=jnp.float32)
    w = jnp.ones((C,), dtype=jnp.float32)        # nn.Parameter(torch.ones(C))
    _check(x, w, tol, tol, "grouped C=32")

    # Row count not a multiple of the packing factor -> exercises wrapper padding.
    x = jax.random.normal(k2, (3, 5, 32), dtype=jnp.float32)
    w = jax.random.normal(k3, (32,), dtype=jnp.float32)
    _check(x, w, tol, tol, "grouped C=32, padded rows")

    # Many packed rows -> multi-step grid with a ragged (masked) last block.
    x = jax.random.normal(k4, (4, 17, 32), dtype=jnp.float32)
    w = jax.random.normal(k5, (32,), dtype=jnp.float32)
    _check(x, w, tol, tol, "grouped C=32, ragged grid")

    # C that does not divide 128 -> lcm(48,128)=384 lane-dense grouped path.
    x = jax.random.normal(k3, (2, 4, 48), dtype=jnp.float32)
    w = jax.random.normal(k4, (48,), dtype=jnp.float32)
    _check(x, w, tol, tol, "grouped C=48 (lcm packing)")

    # Large/awkward C -> plain per-row fallback (pure f32, tight tolerance).
    x = jax.random.normal(k1, (2, 4, 200), dtype=jnp.float32)
    w = jax.random.normal(k2, (200,), dtype=jnp.float32)
    _check(x, w, 1e-5, 1e-5, "plain fallback C=200")

    print("KERNEL_OK")
</pallas_src>

<mosaic_0001>
module attributes {stable_mosaic.version = 11 : i64} {
  func.func @_ln_grouped_kernel(%arg0: i32, %arg1: memref<4x128xf32, #tpu.memory_space<vmem>>, %arg2: memref<1x128xf32, #tpu.memory_space<vmem>>, %arg3: memref<128x128xbf16, #tpu.memory_space<vmem>>, %arg4: memref<4x128xf32, #tpu.memory_space<vmem>>) attributes {dimension_semantics = [#tpu.dimension_semantics<parallel>], iteration_bounds = array<i64: 1>, scalar_prefetch = 0 : i64, scratch_operands = 0 : i64, tpu.core_type = #tpu.core_type<tc>, window_params = [{transform_indices = @transform_0, window_bounds = array<i64: 4, 128>}, {pipeline_mode = #tpu.pipeline_mode<synchronous>, transform_indices = @transform_1, window_bounds = array<i64: 1, 128>}, {pipeline_mode = #tpu.pipeline_mode<synchronous>, transform_indices = @transform_2, window_bounds = array<i64: 128, 128>}, {transform_indices = @transform_3, window_bounds = array<i64: 4, 128>}]} {
    %c0 = arith.constant 0 : index
    %c0_0 = arith.constant 0 : index
    %0 = vector.load %arg1[%c0, %c0_0] : memref<4x128xf32, #tpu.memory_space<vmem>>, vector<4x128xf32>
    %c0_1 = arith.constant 0 : index
    %c0_2 = arith.constant 0 : index
    %1 = vector.load %arg3[%c0_1, %c0_2] : memref<128x128xbf16, #tpu.memory_space<vmem>>, vector<128x128xbf16>
    %2 = arith.truncf %0 : vector<4x128xf32> to vector<4x128xbf16>
    %3 = arith.extf %2 : vector<4x128xbf16> to vector<4x128xf32>
    %4 = arith.subf %0, %3 : vector<4x128xf32>
    %5 = arith.truncf %4 : vector<4x128xf32> to vector<4x128xbf16>
    %cst = arith.constant dense<0.000000e+00> : vector<4x128xf32>
    %6 = tpu.matmul %2, %1, %cst {dimension_numbers = #tpu.dot_dimension_numbers<[1], [0], [0], [1], [0, 0, 1, 1], [], []>} : vector<4x128xbf16>, vector<128x128xbf16>, vector<4x128xf32> -> vector<4x128xf32>
    %cst_3 = arith.constant dense<0.000000e+00> : vector<4x128xf32>
    %7 = tpu.matmul %5, %1, %cst_3 {dimension_numbers = #tpu.dot_dimension_numbers<[1], [0], [0], [1], [0, 0, 1, 1], [], []>} : vector<4x128xbf16>, vector<128x128xbf16>, vector<4x128xf32> -> vector<4x128xf32>
    %8 = arith.addf %6, %7 : vector<4x128xf32>
    %cst_4 = arith.constant 3.125000e-02 : f32
    %9 = vector.broadcast %cst_4 : f32 to vector<4x128xf32>
    %10 = arith.mulf %8, %9 : vector<4x128xf32>
    %11 = arith.subf %0, %10 : vector<4x128xf32>
    %12 = arith.mulf %11, %11 : vector<4x128xf32>
    %13 = arith.truncf %12 : vector<4x128xf32> to vector<4x128xbf16>
    %14 = arith.extf %13 : vector<4x128xbf16> to vector<4x128xf32>
    %15 = arith.subf %12, %14 : vector<4x128xf32>
    %16 = arith.truncf %15 : vector<4x128xf32> to vector<4x128xbf16>
    %cst_5 = arith.constant dense<0.000000e+00> : vector<4x128xf32>
    %17 = tpu.matmul %13, %1, %cst_5 {dimension_numbers = #tpu.dot_dimension_numbers<[1], [0], [0], [1], [0, 0, 1, 1], [], []>} : vector<4x128xbf16>, vector<128x128xbf16>, vector<4x128xf32> -> vector<4x128xf32>
    %cst_6 = arith.constant dense<0.000000e+00> : vector<4x128xf32>
    %18 = tpu.matmul %16, %1, %cst_6 {dimension_numbers = #tpu.dot_dimension_numbers<[1], [0], [0], [1], [0, 0, 1, 1], [], []>} : vector<4x128xbf16>, vector<128x128xbf16>, vector<4x128xf32> -> vector<4x128xf32>
    %19 = arith.addf %17, %18 : vector<4x128xf32>
    %cst_7 = arith.constant 3.125000e-02 : f32
    %20 = vector.broadcast %cst_7 : f32 to vector<4x128xf32>
    %21 = arith.mulf %19, %20 : vector<4x128xf32>
    %cst_8 = arith.constant 9.99999974E-6 : f32
    %22 = vector.broadcast %cst_8 : f32 to vector<4x128xf32>
    %23 = arith.addf %21, %22 : vector<4x128xf32>
    %24 = math.rsqrt %23 : vector<4x128xf32>
    %25 = arith.mulf %0, %24 : vector<4x128xf32>
    %c0_9 = arith.constant 0 : index
    %c0_10 = arith.constant 0 : index
    %26 = vector.load %arg2[%c0_9, %c0_10] : memref<1x128xf32, #tpu.memory_space<vmem>>, vector<1x128xf32>
    %27 = vector.broadcast %26 : vector<1x128xf32> to vector<4x128xf32>
    %28 = arith.mulf %25, %27 : vector<4x128xf32>
    %c0_11 = arith.constant 0 : index
    %c0_12 = arith.constant 0 : index
    %29 = vector.load %arg4[%c0_11, %c0_12] : memref<4x128xf32, #tpu.memory_space<vmem>>, vector<4x128xf32>
    tpu.vector_store %arg4[%c0_11, %c0_12], %28 {strides = array<i32>} : memref<4x128xf32, #tpu.memory_space<vmem>>, vector<4x128xf32>,
    return
  }
  func.func @transform_0(%arg0: i32) -> (i32, i32) {
    %c0_i32 = arith.constant 0 : i32
    %c0_i32_0 = arith.constant 0 : i32
    return %arg0, %c0_i32 : i32, i32
  }
  func.func @transform_1(%arg0: i32) -> (i32, i32) {
    %c0_i32 = arith.constant 0 : i32
    %c0_i32_0 = arith.constant 0 : i32
    %c0_i32_1 = arith.constant 0 : i32
    return %c0_i32, %c0_i32_0 : i32, i32
  }
  func.func @transform_2(%arg0: i32) -> (i32, i32) {
    %c0_i32 = arith.constant 0 : i32
    %c0_i32_0 = arith.constant 0 : i32
    %c0_i32_1 = arith.constant 0 : i32
    return %c0_i32, %c0_i32_0 : i32, i32
  }
  func.func @transform_3(%arg0: i32) -> (i32, i32) {
    %c0_i32 = arith.constant 0 : i32
    %c0_i32_0 = arith.constant 0 : i32
    return %arg0, %c0_i32 : i32, i32
  }
}

</mosaic_0001>

<bundles_post_ra>
// kernel: tpu_custom_call.1
= control target key start
LH: loop header
LB: loop body
LE: loop exit
PB: predicated region body
PF: predicated region fallthrough
CT: control target
= control target key end

     0   :  { %8 = vsyncpa [#allocation3], 0  ;;  %s601_s0 = inlined_call_operand.hbm [shape: f32[4,128], index: 0, kind: input, shape index: {}]   ;;  %s602_s1 = inlined_call_operand.vmem [shape: f32[1,128], index: 1, kind: input, shape index: {}]   ;;  %s603_s2 = inlined_call_operand.hbm [shape: bf16[128,128], index: 2, kind: input, shape index: {}]   ;;  %s604_s3 = inlined_call_operand.hbm [shape: f32[4,128], index: 3, kind: output, shape index: {}]  }
   0x1   :  { %9 = vsyncpa [#allocation6], 0 }
   0x2   :  { %10 = vsyncpa [#allocation4], 0  ;;  %s515_s12 = smov [#allocation2]   ;;  %s516_s14 = smov [#allocation5]  }
   0x3   :  { %s17_s13 = sshll.u32 %s515_s12, 4  ;;  %s28_s15 = sshll.u32 %s516_s14, 4  ;;  %s18_s13 = int_to_ptr.vmem [resolvable:$true] %s17_s13  ;;  %s29_s15 = int_to_ptr.vmem [resolvable:$true] %s28_s15 }
   0x4   :  { %s457_s16 = scalar_lea.vmem %s18_s13, 64  ;;  %p462_p1 = scmp.lt.s32.totalorder %s18_s13, %s18_s13 }
   0x5   :  { %p458_p0 = scmp.ne.s32.totalorder %s18_s13, %s457_s16  ;;  %p463_p2 = scmp.lt.s32.totalorder %s457_s16, %s457_s16 }
   0x7   :  { %p464_p3 = por %p463_p2, %p462_p1 }
   0x9   :  { %p465_p4 = pnand %p464_p3, %p458_p0 }
   0xb   :  { %468 = shalt.err (!%p465_p4)
}
   0xc   :  { %20 = dma.hbm_to_vmem [thread:$0]  %s601_s0, 64, %s18_s13, [#allocation3]  }
   0xd   :  { %s477_s19 = scalar_lea.vmem %s29_s15, 1024  ;;  %p482_p6 = scmp.lt.s32.totalorder %s29_s15, %s29_s15 }
   0xe   :  { %p478_p5 = scmp.ne.s32.totalorder %s29_s15, %s477_s19  ;;  %p483_p7 = scmp.lt.s32.totalorder %s477_s19, %s477_s19 }
  0x10   :  { %p484_p8 = por %p483_p7, %p482_p6 }
  0x12   :  { %p485_p9 = pnand %p484_p8, %p478_p5 }
  0x14   :  { %488 = shalt.err (!%p485_p9)
}
  0x15   :  { %s517_s20 = smov 64   ;;  %s518_s21 = smov 4  }
  0x16   :  { %34 = dma.hbm_to_vmem [thread:$0]  %s603_s2, 1024, %s29_s15, [#allocation6], %s517_s20, %s517_s20, %s518_s21  }
  0x17   :  { %509 = dma.done.wait [#allocation3], 64  }
  0x18   :  { %510 = vsyncadd [#allocation3], 4294967232 }
  0x19   :  { %511 = dma.done.wait [#allocation6], 1024  }
  0x1a   :  { %512 = vsyncadd [#allocation6], 4294966272  ;;  %v519_v0 = vmov 0.0   ;;  %vm520_vm0 = vmmov 0   ;;  %v439_v1 = vld [vmem:[#allocation5 + $0x38] sm:$0xff]   ;;  %v440_v2 = vld [vmem:[#allocation5 + $0x30] sm:$0xff]  }
  0x1b   :  { %352 = vmatprep.subr.bf16.mxu0 %v519_v0  ;;  %372 = vmatprep.subr.bf16.mxu1 %v519_v0  ;;  %v441_v3 = vld [vmem:[#allocation5 + $0x28] sm:$0xff]   ;;  %v442_v4 = vld [vmem:[#allocation5 + $0x20] sm:$0xff]   ;;  %v443_v5 = vld [vmem:[#allocation5 + $0x18] sm:$0xff]   ;;  %s521_s24 = smov [#allocation7]  }
  0x1c   :  { %368 = vmatprep.mubr.msk.bf16.mxu0 %vm520_vm0, %v519_v0  ;;  %388 = vmatprep.mubr.msk.bf16.mxu1 %vm520_vm0, %v519_v0  ;;  %v560_v6 = vld [vmem:[#allocation2] sm:$0xf]  ;;  %v444_v8 = vld [vmem:[#allocation5 + $0x10] sm:$0xff]   ;;  %v445_v10 = vld [vmem:[#allocation5 + $0x8] sm:$0xff]   ;;  %s297_s25 = sshll.u32 %s521_s24, 4  ;;  %s298_s25 = int_to_ptr.vmem [resolvable:$true] %s297_s25 }
  0x1d   :  { %353 = vmatpush3.bf16.msra.mxu0 %v439_v1  ;;  %373 = vmatpush3.bf16.msra.mxu1 %v439_v1  ;;  %v59_v7 = vpack.c.bf16 %v560_v6, %v560_v6  ;;  %v446_v12 = vld [vmem:[#allocation5] sm:$0xff]   ;;  %v315_v42 = vld [vmem:[%s602_s1] ss:$0 sm:$0xff]  ;;  %s489_s26 = scalar_lea.vmem %s298_s25, 64  ;;  %p494_p11 = scmp.lt.s32.totalorder %s298_s25, %s298_s25 }
  0x1e   :  { %354 = vmatprep.subr.bf16.mxu0 %v519_v0  ;;  %374 = vmatprep.subr.bf16.mxu1 %v519_v0  ;;  %p490_p10 = scmp.ne.s32.totalorder %s298_s25, %s489_s26  ;;  %p495_p12 = scmp.lt.s32.totalorder %s489_s26, %s489_s26 }
  0x1f   :  { %v60_v9 = vunpack.c.l.bf16 %v59_v7 }
  0x20   :  { %p496_p13 = por %p495_p12, %p494_p11 }
  0x21   :  { %355 = vmatpush3.bf16.msra.mxu0 %v440_v2  ;;  %375 = vmatpush3.bf16.msra.mxu1 %v440_v2  ;;  %v61_v11 = vsub.f32 %v560_v6, %v60_v9 }
  0x22   :  { %356 = vmatprep.subr.bf16.mxu0 %v519_v0  ;;  %376 = vmatprep.subr.bf16.mxu1 %v519_v0  ;;  %p497_p0 = pnand %p496_p13, %p490_p10 }
  0x23   :  { %v62_v13 = vpack.c.bf16 %v61_v11, %v61_v11 }
  0x25   :  { %357 = vmatpush3.bf16.msra.mxu0 %v441_v3  ;;  %377 = vmatpush3.bf16.msra.mxu1 %v441_v3 }
  0x26   :  { %358 = vmatprep.subr.bf16.mxu0 %v519_v0  ;;  %378 = vmatprep.subr.bf16.mxu1 %v519_v0 }
  0x29   :  { %359 = vmatpush3.bf16.msra.mxu0 %v442_v4  ;;  %379 = vmatpush3.bf16.msra.mxu1 %v442_v4 }
  0x2a   :  { %360 = vmatprep.subr.bf16.mxu0 %v519_v0  ;;  %380 = vmatprep.subr.bf16.mxu1 %v519_v0 }
  0x2d   :  { %361 = vmatpush3.bf16.msra.mxu0 %v443_v5  ;;  %381 = vmatpush3.bf16.msra.mxu1 %v443_v5 }
  0x2e   :  { %362 = vmatprep.subr.bf16.mxu0 %v519_v0  ;;  %382 = vmatprep.subr.bf16.mxu1 %v519_v0 }
  0x31   :  { %363 = vmatpush3.bf16.msra.mxu0 %v444_v8  ;;  %383 = vmatpush3.bf16.msra.mxu1 %v444_v8 }
  0x32   :  { %364 = vmatprep.subr.bf16.mxu0 %v519_v0  ;;  %384 = vmatprep.subr.bf16.mxu1 %v519_v0 }
  0x35   :  { %365 = vmatpush3.bf16.msra.mxu0 %v445_v10  ;;  %385 = vmatpush3.bf16.msra.mxu1 %v445_v10 }
  0x36   :  { %366 = vmatprep.subr.bf16.mxu0 %v519_v0  ;;  %386 = vmatprep.subr.bf16.mxu1 %v519_v0 }
  0x39   :  { %367 = vmatpush3.bf16.msra.mxu0 %v446_v12  ;;  %387 = vmatpush3.bf16.msra.mxu1 %v446_v12 }
  0x3a   :  { %412 = vmatprep.subr.bf16.mxu1 %v519_v0  ;;  %392 = vmatprep.subr.bf16.mxu0 %v519_v0 }
  0x3c   :  { %369 = vmatmul.mubr.bf16.vlgmr.msra.gmra.mxu0 %v62_v13  ;;  %389 = vmatmul.mubr.bf16.vlgmr.msra.gmra.mxu1 %v59_v7 }
  0x3d   :  { %413 = vmatpush3.bf16.msra.mxu1 %v439_v1  ;;  %393 = vmatpush3.bf16.msra.mxu0 %v439_v1 }
  0x3e   :  { %414 = vmatprep.subr.bf16.mxu1 %v519_v0  ;;  %394 = vmatprep.subr.bf16.mxu0 %v519_v0 }
  0x3f   :  { %428 = vmatprep.mubr.msk.bf16.mxu1 %vm520_vm0, %v519_v0  ;;  %408 = vmatprep.mubr.msk.bf16.mxu0 %vm520_vm0, %v519_v0 }
  0x41   :  { %415 = vmatpush3.bf16.msra.mxu1 %v440_v2  ;;  %395 = vmatpush3.bf16.msra.mxu0 %v440_v2 }
  0x42   :  { %416 = vmatprep.subr.bf16.mxu1 %v519_v0  ;;  %396 = vmatprep.subr.bf16.mxu0 %v519_v0 }
  0x45   :  { %417 = vmatpush3.bf16.msra.mxu1 %v441_v3  ;;  %397 = vmatpush3.bf16.msra.mxu0 %v441_v3 }
  0x46   :  { %418 = vmatprep.subr.bf16.mxu1 %v519_v0  ;;  %398 = vmatprep.subr.bf16.mxu0 %v519_v0 }
  0x49   :  { %419 = vmatpush3.bf16.msra.mxu1 %v442_v4  ;;  %399 = vmatpush3.bf16.msra.mxu0 %v442_v4 }
  0x4a   :  { %420 = vmatprep.subr.bf16.mxu1 %v519_v0  ;;  %400 = vmatprep.subr.bf16.mxu0 %v519_v0 }
  0x4d   :  { %421 = vmatpush3.bf16.msra.mxu1 %v443_v5  ;;  %401 = vmatpush3.bf16.msra.mxu0 %v443_v5 }
  0x4e   :  { %422 = vmatprep.subr.bf16.mxu1 %v519_v0  ;;  %402 = vmatprep.subr.bf16.mxu0 %v519_v0 }
  0x51   :  { %423 = vmatpush3.bf16.msra.mxu1 %v444_v8  ;;  %403 = vmatpush3.bf16.msra.mxu0 %v444_v8 }
  0x52   :  { %424 = vmatprep.subr.bf16.mxu1 %v519_v0  ;;  %404 = vmatprep.subr.bf16.mxu0 %v519_v0 }
  0x55   :  { %425 = vmatpush3.bf16.msra.mxu1 %v445_v10  ;;  %405 = vmatpush3.bf16.msra.mxu0 %v445_v10 }
  0x56   :  { %426 = vmatprep.subr.bf16.mxu1 %v519_v0  ;;  %406 = vmatprep.subr.bf16.mxu0 %v519_v0 }
  0x59   :  { %427 = vmatpush3.bf16.msra.mxu1 %v446_v12  ;;  %407 = vmatpush3.bf16.msra.mxu0 %v446_v12 }
  0xfc   :  { %v145_v14 = vpop.f32.mrf.mxu0  ;;  %v185_v15 = vpop.f32.mrf.mxu1 }
  0xfd   :  { %v186_v16 = vadd.f32 %v185_v15, %v145_v14 }
  0xfe   :  { %v370_v17 = vpop.f32.mrf.mxu0  ;;  %v390_v18 = vpop.f32.mrf.mxu1 }
  0xff   :  { %v191_v19 = vmul.f32 0.03125, %v186_v16 }
 0x100   :  { %v148_v20 = vpop.f32.mrf.mxu0  ;;  %v188_v21 = vpop.f32.mrf.mxu1 }
 0x101   :  { %v192_v22 = vsub.f32 %v560_v6, %v191_v19 }
 0x102   :  { %v371_v23 = vpop.f32.mrf.mxu0  ;;  %v391_v24 = vpop.f32.mrf.mxu1 }
 0x103   :  { %v193_v25 = vmul.f32 %v192_v22, %v192_v22 }
 0x105   :  { %v194_v26 = vpack.c.bf16 %v193_v25, %v193_v25 }
 0x107   :  { %v195_v27 = vunpack.c.l.bf16 %v194_v26  ;;  %429 = vmatmul.mubr.bf16.vlgmr.msra.gmra.mxu1 %v194_v26 }
 0x109   :  { %v196_v28 = vsub.f32 %v193_v25, %v195_v27 }
 0x10b   :  { %v197_v29 = vpack.c.bf16 %v196_v28, %v196_v28 }
 0x10d   :  { %409 = vmatmul.mubr.bf16.vlgmr.msra.gmra.mxu0 %v197_v29 }
 0x1c7   :  { %v272_v30 = vpop.f32.mrf.mxu1 }
 0x1c9   :  { %v430_v31 = vpop.f32.mrf.mxu1 }
 0x1cb   :  { %v275_v32 = vpop.f32.mrf.mxu1 }
 0x1cd   :  { %v232_v33 = vpop.f32.mrf.mxu0  ;;  %v431_v34 = vpop.f32.mrf.mxu1 }
 0x1ce   :  { %v273_v35 = vadd.f32 %v272_v30, %v232_v33 }
 0x1cf   :  { %v410_v36 = vpop.f32.mrf.mxu0 }
 0x1d0   :  { %v278_v37 = vmul.f32 0.03125, %v273_v35 }
 0x1d1   :  { %v235_v38 = vpop.f32.mrf.mxu0 }
 0x1d2   :  { %v279_v39 = vadd.f32 1e-05, %v278_v37 }
 0x1d3   :  { %v411_v40 = vpop.f32.mrf.mxu0 }
 0x1d4   :  { %447 = vrsqrt.f32 %v279_v39 }
 0x1e1   :  { %v448_v41 = vpop.eup %447 }
 0x1e2   :  { %v281_v43 = vmul.f32 %v448_v41, %v560_v6 }
 0x1e4   :  { %v289_v44 = vmul.f32 %v315_v42, %v281_v43 }
 0x1e6   :  { %290 = vst [vmem:[#allocation7] sm:$0xf] %v289_v44 }
 0x1e7   :  { %500 = shalt.err (!%p497_p0)
}
 0x1e8   :  { %300 = dma.vmem_to_hbm [thread:$0]  %s298_s25, 64, %s604_s3, [#allocation4]  }
 0x1e9   :  { %513 = dma.done.wait [#allocation4], 64  }
 0x1ea   :  { %514 = vsyncadd [#allocation4], 4294967232 }
 0x1eb   :  { %304 = vsyncpa [#allocation3], 1 }
 0x1ec   :  { %305 = vsyncpa [#allocation6], 1 }
 0x1ed   :  { %306 = vsyncpa [#allocation4], 1 }

</bundles_post_ra>
